<compile_context>
chip_gen: v7x
topology: tpu7x:2x2x1
jax: 0.10.0
libtpu: 0.0.40
codegen_flags: <defaults>
</compile_context>

<pallas_src>
import numpy as np
import jax
import jax.numpy as jnp
from jax.experimental import pallas as pl
from jax.experimental.pallas import tpu as pltpu


# --------------------------------------------------------------------------------------
# Kernel
# --------------------------------------------------------------------------------------
def _attention_kernel(hid_ref, enc_ref, wh_ref, we_ref, b_ref, coe_ref, sm_ref):
    """One batch tile of the Attention forward.

    hid_ref : (TB, H)       f32   decoder hidden states for this tile (prev_hidden[-1])
    enc_ref : (S, TB, H)    any   encoder outputs, native seq-major layout/dtype
    wh_ref  : (H, H)        bf16  hidden half of nn.Linear(2H, H).weight.T
    we_ref  : (H, H)        bf16  encoder half of nn.Linear(2H, H).weight.T
    b_ref   : (1, H)        f32   linear bias
    coe_ref : (1, H)        f32   attn_weight_coe
    sm_ref  : (TB, S_pad)   f32   softmax attention weights (lane-dense, padded seq axis)
    """
    S, TB, H = enc_ref.shape
    S_pad = sm_ref.shape[-1]

    # Hidden half of the Linear: one small matmul per tile, shared across all S
    # (atten_hidden[s] == hidden for every s); bias folded in here. bf16 operands,
    # f32 accumulation.
    h = hid_ref[...].astype(jnp.bfloat16)                                        # (TB, H)
    hw = jnp.dot(h, wh_ref[...], preferred_element_type=jnp.float32) + b_ref[...]  # (TB, H)

    # Encoder half: fold (S, TB) into the MXU M dimension; bf16 operands, f32 accumulate.
    # (If encoder_outputs already arrive in bf16, the astype is a no-op.)
    e = enc_ref[...].reshape(S * TB, H).astype(jnp.bfloat16)
    ew = jnp.dot(e, we_ref[...], preferred_element_type=jnp.float32)             # (S*TB, H)

    a = jnp.tanh(ew.reshape(S, TB, H) + hw[None, :, :])                          # (S, TB, H)

    # attention[s, t] = sum_h coe[h] * a[s, t, h]  — VPU multiply + lane reduce.
    # (Alternative: MXU contraction against coe padded to (H,128) if the XLU slot binds.)
    coe = coe_ref[...].reshape(1, 1, H)
    scores = jnp.sum(a * coe, axis=-1)                                           # (S, TB)

    # Lane-dense output: pad the sequence (sublane) axis to S_pad before the softmax.
    # Fill with -1e30 so exp() underflows to exactly 0 and the softmax over the real S
    # entries is unchanged; the padded columns of the output are exactly 0.
    if S_pad > S:
        fill = jnp.full((S_pad - S, TB), -1e30, dtype=scores.dtype)
        scores = jnp.concatenate([scores, fill], axis=0)                         # (S_pad, TB)

    # Softmax over the sequence dim in a lane-dense (TB, S_pad) layout.
    scores = scores.T                                                            # (TB, S_pad)
    m = jnp.max(scores, axis=-1, keepdims=True)
    p = jnp.exp(scores - m)
    denom = jnp.sum(p, axis=-1, keepdims=True)                                   # (TB, 1)
    # approx=True: EUP reciprocal (free slot). Rows sum to 1 only to ~1e-3 relative; use
    # approx=False if a downstream consumer requires exactly-normalized probabilities.
    sm_ref[...] = p * pl.reciprocal(denom, approx=True)                          # (TB, S_pad)


# --------------------------------------------------------------------------------------
# Tiling policy (generation-aware)
# --------------------------------------------------------------------------------------
def _round_up(x, m):
    return (x + m - 1) // m * m


def _tpu_vmem_and_cores():
    """Best-effort query of (physical VMEM bytes per core, # TensorCores per chip).

    Falls back to conservative values (64 MiB = v7x per-TC VMEM, 1 core) if the query or
    attribute names are unavailable, so the wrapper never fails on this path.
    """
    vmem = 64 << 20
    cores = 1
    try:
        info = pltpu.get_tpu_info()
        v = getattr(info, "vmem_capacity_bytes", None)
        if v:
            vmem = int(v)
        for attr in ("num_cores", "tensorcore_count", "num_tensorcores", "cores_per_chip"):
            c = getattr(info, attr, None)
            if c:
                cores = int(c)
                break
    except Exception:
        pass
    if cores == 1:
        try:
            if "v7" in jax.devices()[0].device_kind.lower():
                cores = 2
        except Exception:
            pass
    return vmem, cores


def _pick_batch_tile(B_pad, S, S_pad, H, enc_itemsize, vmem_limit_bytes, num_cores):
    """Pick the batch-tile size TB.

    Constraints: B_pad % TB == 0 and (TB == B_pad or TB % 8 == 0) for (8,128) tiling.
    The per-step VMEM footprint estimate covers the double-buffered encoder block PLUS the
    in-kernel temporaries (bf16 copy `e`, f32 `ew` and `a`), the output/hidden blocks and
    the (single-buffered) weights, and must fit ~60% of the scoped VMEM limit.
    On 1-TC chips (v5e/v6e) the grid is a serial loop, so the single largest fitting tile
    wins; on multi-TC chips (v7x) prefer a step count divisible by the core count so the
    "parallel" batch axis gives balanced work.
    """
    if B_pad <= 8:
        return B_pad                                   # single tiny step
    budget = int(0.6 * vmem_limit_bytes)

    def footprint(tb):
        elems = tb * S * H
        f = 2 * elems * enc_itemsize                   # double-buffered encoder block
        f += elems * 2                                 # bf16 copy `e`
        f += elems * 4 * 2                             # f32 temporaries ew + a
        f += 2 * tb * S_pad * 4                        # double-buffered output block
        f += 4 * tb * H * 4                            # hidden block (dbl-buf) + hw/h temps
        f += 3 * H * H * 4                             # weights (single-buffered) + consts
        return f

    cands = [tb for tb in range(8, B_pad + 1, 8)
             if B_pad % tb == 0 and footprint(tb) <= budget]
    if not cands:
        return 8                                       # minimum well-formed tile
    if num_cores >= 2:
        balanced = [tb for tb in cands if (B_pad // tb) % num_cores == 0]
        if balanced:
            return max(balanced)
    return max(cands)


# --------------------------------------------------------------------------------------
# Wrapper
# --------------------------------------------------------------------------------------
def generation_probability_forward(input_ids, prev_hidden, encoder_outputs, params):
    """Mirrors GenerationProbability.forward.

    input_ids       : (1, B) int32  -- index of a single word per batch element
    prev_hidden     : (L, B, H)     -- decoder RNN hidden states; uses prev_hidden[-1]
    encoder_outputs : (S, B, H)     -- any float dtype (bf16 consumed natively)
    Returns (context (B,1,H), scored_attn (B,1,S), embedded (1,B,H)).
    """
    emb_table, W_attn, b_attn, coe = params
    H = emb_table.shape[1]
    S, B, _ = encoder_outputs.shape

    # ---- glue (plain JAX): embedding lookup + dropout ----
    embedded = emb_table[input_ids].astype(jnp.float32).reshape(1, B, H)
    # TODO(synk): self.dropout / self.embedding are never defined in the original __init__;
    # embedding = lookup into pre_train_weight, dropout = identity (eval mode).

    hidden = prev_hidden[-1].astype(jnp.float32)                       # (B, H)

    # nn.Linear(2H, H): y = x @ W.T + b with x = cat([hidden_rep, enc]); split W.T in two.
    W_h = W_attn[:, :H].T.astype(jnp.bfloat16)                         # (H, H) bf16 MXU operand
    W_e = W_attn[:, H:].T.astype(jnp.bfloat16)                         # (H, H) bf16 MXU operand
    bias = b_attn.reshape(1, H).astype(jnp.float32)
    coe_row = coe.reshape(1, H).astype(jnp.float32)

    # Encoder outputs consumed in their NATIVE (S, B, H) layout & dtype — no wrapper
    # transpose / upcast HBM pass.
    enc = encoder_outputs

    # Pad batch up to a multiple of 8 (only when needed) so a budget-respecting TB always
    # exists; padded rows produce well-defined garbage and are sliced off below.
    if B > 8 and B % 8 != 0:
        B_pad = _round_up(B, 8)
        hidden_p = jnp.pad(hidden, ((0, B_pad - B), (0, 0)))
        enc_p = jnp.pad(enc, ((0, 0), (0, B_pad - B), (0, 0)))
    else:
        B_pad, hidden_p, enc_p = B, hidden, enc

    S_pad = _round_up(S, 128)                                          # lane-dense output slab

    vmem_phys, num_cores = _tpu_vmem_and_cores()
    vmem_limit = max(32 << 20, min(int(0.75 * vmem_phys), 100 << 20))
    TB = _pick_batch_tile(B_pad, S, S_pad, H, enc_p.dtype.itemsize, vmem_limit, num_cores)

    def _call(single_buffer_consts):
        const_kw = {"pipeline_mode": pl.Buffered(1)} if single_buffer_consts else {}
        return pl.pallas_call(
            _attention_kernel,
            out_shape=jax.ShapeDtypeStruct((B_pad, S_pad), jnp.float32),
            grid_spec=pltpu.PrefetchScalarGridSpec(
                num_scalar_prefetch=0,
                grid=(B_pad // TB,),
                in_specs=[
                    pl.BlockSpec((TB, H), lambda b: (b, 0)),           # hidden
                    pl.BlockSpec((S, TB, H), lambda b: (0, b, 0)),     # encoder outputs
                    pl.BlockSpec((H, H), lambda b: (0, 0), **const_kw),  # W_h (bf16)
                    pl.BlockSpec((H, H), lambda b: (0, 0), **const_kw),  # W_e (bf16)
                    pl.BlockSpec((1, H), lambda b: (0, 0), **const_kw),  # bias
                    pl.BlockSpec((1, H), lambda b: (0, 0), **const_kw),  # attn_weight_coe
                ],
                out_specs=pl.BlockSpec((TB, S_pad), lambda b: (b, 0)),  # lane-dense scores
            ),
            compiler_params=pltpu.CompilerParams(
                dimension_semantics=("parallel",),
                vmem_limit_bytes=vmem_limit),
        )(hidden_p, enc_p, W_h, W_e, bias, coe_row)

    try:
        scored = _call(True)
    except Exception:
        # TODO(synk): fallback for jax builds where pl.Buffered(1) single-buffering of
        # constant BlockSpecs is not supported; identical semantics, slightly more VMEM.
        scored = _call(False)

    scored_attn = scored[:B, :S].reshape(B, 1, S)

    # context = bmm(scored_attn, atten_hidden): every row of atten_hidden equals `hidden`
    # and the softmax weights sum to 1, so context == hidden; the bmm is deleted.
    context = hidden.reshape(B, 1, H)

    # TODO(synk): original einsum string 'ijk, ikh -> ih1' is malformed; implemented as the
    # intended bmm(scored_attn, atten_hidden). context_weight (nn.Linear missing
    # out_features) is never used in forward and is omitted.
    return context, scored_attn, embedded


# --------------------------------------------------------------------------------------
# Pure-JAX reference (full f32, mirrors the PyTorch module)
# --------------------------------------------------------------------------------------
def _reference(input_ids, prev_hidden, encoder_outputs, params):
    emb_table, W_attn, b_attn, coe = params
    H = emb_table.shape[1]
    S, B, _ = encoder_outputs.shape
    hidden = prev_hidden[-1]                                  # (B, H)
    atten_hidden = jnp.broadcast_to(hidden[:, None, :], (B, S, H))
    enc = jnp.transpose(encoder_outputs, (1, 0, 2))           # (B, S, H)
    cat = jnp.concatenate([atten_hidden, enc], axis=2)        # (B, S, 2H)
    attn = jnp.tanh(cat @ W_attn.T + b_attn)                  # (B, S, H)
    attention = jnp.einsum('h,bsh->bs', coe, attn)            # (B, S)
    scored = jax.nn.softmax(attention, axis=1)[:, None, :]    # (B, 1, S)
    context = jnp.einsum('bjs,bsh->bjh', scored, atten_hidden)
    return context, scored


if __name__ == "__main__":
    B, S, H, L, VOCAB = 2, 8, 32, 2, 50

    key = jax.random.PRNGKey(0)
    k1, k2, k3, k4, k5, k6, k7 = jax.random.split(key, 7)

    # Deterministic parameter init (pre_train_weight -> embedding table of shape (VOCAB, H)).
    emb_table = jax.random.normal(k1, (VOCAB, H), dtype=jnp.float32)
    W_attn = (jax.random.normal(k2, (H, 2 * H), dtype=jnp.float32)
              * (1.0 / np.sqrt(2 * H)))                       # nn.Linear(2H, H).weight
    b_attn = jax.random.normal(k3, (H,), dtype=jnp.float32) * 0.01
    coe = jax.random.uniform(k4, (H,), dtype=jnp.float32)     # attn_weight_coe ~ torch.rand
    params = (emb_table, W_attn, b_attn, coe)

    # Example inputs.
    input_ids = jax.random.randint(k5, (1, B), 0, VOCAB, dtype=jnp.int32)
    prev_hidden = jax.random.normal(k6, (L, B, H), dtype=jnp.float32)
    encoder_outputs = jax.random.normal(k7, (S, B, H), dtype=jnp.float32)

    context, scored_attn, embedded = generation_probability_forward(
        input_ids, prev_hidden, encoder_outputs, params)
    jax.block_until_ready((context, scored_attn, embedded))

    # Correctness check against a pure-f32 JAX reference.
    ref_ctx, ref_sm = _reference(input_ids, prev_hidden, encoder_outputs, params)

    # context == hidden identity: tight check.
    np.testing.assert_allclose(np.asarray(context), np.asarray(ref_ctx),
                               rtol=1e-5, atol=1e-6)
    # Both matmul halves use bf16 MXU operands and the softmax uses the EUP approximate
    # reciprocal, so differences vs the pure-f32 reference are at the few-percent level.
    np.testing.assert_allclose(np.asarray(scored_attn), np.asarray(ref_sm),
                               rtol=1e-1, atol=2e-2)

    # Softmax rows over the valid sequence positions sum to ~1 (approx reciprocal).
    row_sums = np.asarray(scored_attn).sum(-1)
    np.testing.assert_allclose(row_sums, np.ones_like(row_sums), rtol=2e-2, atol=2e-2)

    print("KERNEL_OK")
</pallas_src>

<mosaic_0001>
module attributes {stable_mosaic.version = 11 : i64} {
  func.func @_attention_kernel(%arg0: i32, %arg1: memref<2x32xf32, #tpu.memory_space<vmem>>, %arg2: memref<8x2x32xf32, #tpu.memory_space<vmem>>, %arg3: memref<32x32xbf16, #tpu.memory_space<vmem>>, %arg4: memref<32x32xbf16, #tpu.memory_space<vmem>>, %arg5: memref<1x32xf32, #tpu.memory_space<vmem>>, %arg6: memref<1x32xf32, #tpu.memory_space<vmem>>, %arg7: memref<2x128xf32, #tpu.memory_space<vmem>>) attributes {dimension_semantics = [#tpu.dimension_semantics<parallel>], iteration_bounds = array<i64: 1>, scalar_prefetch = 0 : i64, scratch_operands = 0 : i64, tpu.core_type = #tpu.core_type<tc>, window_params = [{transform_indices = @transform_0, window_bounds = array<i64: 2, 32>}, {transform_indices = @transform_1, window_bounds = array<i64: 8, 2, 32>}, {pipeline_mode = #tpu.pipeline_mode<synchronous>, transform_indices = @transform_2, window_bounds = array<i64: 32, 32>}, {pipeline_mode = #tpu.pipeline_mode<synchronous>, transform_indices = @transform_3, window_bounds = array<i64: 32, 32>}, {pipeline_mode = #tpu.pipeline_mode<synchronous>, transform_indices = @transform_4, window_bounds = array<i64: 1, 32>}, {pipeline_mode = #tpu.pipeline_mode<synchronous>, transform_indices = @transform_5, window_bounds = array<i64: 1, 32>}, {transform_indices = @transform_6, window_bounds = array<i64: 2, 128>}]} {
    %c0 = arith.constant 0 : index
    %c0_0 = arith.constant 0 : index
    %0 = vector.load %arg1[%c0, %c0_0] : memref<2x32xf32, #tpu.memory_space<vmem>>, vector<2x32xf32>
    %1 = arith.truncf %0 : vector<2x32xf32> to vector<2x32xbf16>
    %c0_1 = arith.constant 0 : index
    %c0_2 = arith.constant 0 : index
    %2 = vector.load %arg3[%c0_1, %c0_2] : memref<32x32xbf16, #tpu.memory_space<vmem>>, vector<32x32xbf16>
    %cst = arith.constant dense<0.000000e+00> : vector<2x32xf32>
    %3 = tpu.matmul %1, %2, %cst {dimension_numbers = #tpu.dot_dimension_numbers<[1], [0], [0], [1], [0, 0, 1, 1], [], []>} : vector<2x32xbf16>, vector<32x32xbf16>, vector<2x32xf32> -> vector<2x32xf32>
    %c0_3 = arith.constant 0 : index
    %c0_4 = arith.constant 0 : index
    %4 = vector.load %arg5[%c0_3, %c0_4] : memref<1x32xf32, #tpu.memory_space<vmem>>, vector<1x32xf32>
    %5 = vector.broadcast %4 : vector<1x32xf32> to vector<2x32xf32>
    %6 = arith.addf %3, %5 : vector<2x32xf32>
    %c0_5 = arith.constant 0 : index
    %c0_6 = arith.constant 0 : index
    %c0_7 = arith.constant 0 : index
    %7 = vector.load %arg2[%c0_5, %c0_6, %c0_7] : memref<8x2x32xf32, #tpu.memory_space<vmem>>, vector<8x2x32xf32>
    %8 = vector.shape_cast %7 : vector<8x2x32xf32> to vector<16x32xf32>
    %9 = arith.truncf %8 : vector<16x32xf32> to vector<16x32xbf16>
    %c0_8 = arith.constant 0 : index
    %c0_9 = arith.constant 0 : index
    %10 = vector.load %arg4[%c0_8, %c0_9] : memref<32x32xbf16, #tpu.memory_space<vmem>>, vector<32x32xbf16>
    %cst_10 = arith.constant dense<0.000000e+00> : vector<16x32xf32>
    %11 = tpu.matmul %9, %10, %cst_10 {dimension_numbers = #tpu.dot_dimension_numbers<[1], [0], [0], [1], [0, 0, 1, 1], [], []>} : vector<16x32xbf16>, vector<32x32xbf16>, vector<16x32xf32> -> vector<16x32xf32>
    %12 = vector.shape_cast %11 : vector<16x32xf32> to vector<8x2x32xf32>
    %13 = vector.shape_cast %6 : vector<2x32xf32> to vector<1x2x32xf32>
    %14 = vector.broadcast %13 : vector<1x2x32xf32> to vector<8x2x32xf32>
    %15 = arith.addf %12, %14 : vector<8x2x32xf32>
    %16 = math.tanh %15 : vector<8x2x32xf32>
    %c0_11 = arith.constant 0 : index
    %c0_12 = arith.constant 0 : index
    %17 = vector.load %arg6[%c0_11, %c0_12] : memref<1x32xf32, #tpu.memory_space<vmem>>, vector<1x32xf32>
    %18 = vector.shape_cast %17 : vector<1x32xf32> to vector<1x1x32xf32>
    %19 = vector.broadcast %18 : vector<1x1x32xf32> to vector<8x2x32xf32>
    %20 = arith.mulf %16, %19 : vector<8x2x32xf32>
    %cst_13 = arith.constant dense<0.000000e+00> : vector<8x2xf32>
    %21 = vector.multi_reduction <add>, %20, %cst_13 [2] : vector<8x2x32xf32> to vector<8x2xf32>
    %cst_14 = arith.constant -1.000000e+30 : f32
    %22 = vector.broadcast %cst_14 : f32 to vector<120x2xf32>
    %23 = tpu.concatenate %21, %22 in 0 : vector<8x2xf32>, vector<120x2xf32> -> vector<128x2xf32>
    %24 = tpu.transpose %23, [1, 0] : vector<128x2xf32> -> vector<2x128xf32>
    %cst_15 = arith.constant dense<0xFF800000> : vector<2xf32>
    %25 = vector.multi_reduction <maximumf>, %24, %cst_15 [1] : vector<2x128xf32> to vector<2xf32>
    %26 = vector.shape_cast %25 : vector<2xf32> to vector<2x1xf32>
    %27 = vector.broadcast %26 : vector<2x1xf32> to vector<2x128xf32>
    %28 = arith.subf %24, %27 : vector<2x128xf32>
    %29 = math.exp %28 : vector<2x128xf32>
    %cst_16 = arith.constant dense<0.000000e+00> : vector<2xf32>
    %30 = vector.multi_reduction <add>, %29, %cst_16 [1] : vector<2x128xf32> to vector<2xf32>
    %31 = vector.shape_cast %30 : vector<2xf32> to vector<2x1xf32>
    %32 = tpu.reciprocal %31 {approx = true} : vector<2x1xf32> -> vector<2x1xf32>
    %33 = vector.broadcast %32 : vector<2x1xf32> to vector<2x128xf32>
    %34 = arith.mulf %29, %33 : vector<2x128xf32>
    %c0_17 = arith.constant 0 : index
    %c0_18 = arith.constant 0 : index
    %35 = vector.load %arg7[%c0_17, %c0_18] : memref<2x128xf32, #tpu.memory_space<vmem>>, vector<2x128xf32>
    tpu.vector_store %arg7[%c0_17, %c0_18], %34 {strides = array<i32>} : memref<2x128xf32, #tpu.memory_space<vmem>>, vector<2x128xf32>,
    return
  }
  func.func @transform_0(%arg0: i32) -> (i32, i32) {
    %c0_i32 = arith.constant 0 : i32
    %c0_i32_0 = arith.constant 0 : i32
    return %arg0, %c0_i32 : i32, i32
  }
  func.func @transform_1(%arg0: i32) -> (i32, i32, i32) {
    %c0_i32 = arith.constant 0 : i32
    %c0_i32_0 = arith.constant 0 : i32
    %c0_i32_1 = arith.constant 0 : i32
    return %c0_i32, %arg0, %c0_i32_0 : i32, i32, i32
  }
  func.func @transform_2(%arg0: i32) -> (i32, i32) {
    %c0_i32 = arith.constant 0 : i32
    %c0_i32_0 = arith.constant 0 : i32
    %c0_i32_1 = arith.constant 0 : i32
    return %c0_i32, %c0_i32_0 : i32, i32
  }
  func.func @transform_3(%arg0: i32) -> (i32, i32) {
    %c0_i32 = arith.constant 0 : i32
    %c0_i32_0 = arith.constant 0 : i32
    %c0_i32_1 = arith.constant 0 : i32
    return %c0_i32, %c0_i32_0 : i32, i32
  }
  func.func @transform_4(%arg0: i32) -> (i32, i32) {
    %c0_i32 = arith.constant 0 : i32
    %c0_i32_0 = arith.constant 0 : i32
    %c0_i32_1 = arith.constant 0 : i32
    return %c0_i32, %c0_i32_0 : i32, i32
  }
  func.func @transform_5(%arg0: i32) -> (i32, i32) {
    %c0_i32 = arith.constant 0 : i32
    %c0_i32_0 = arith.constant 0 : i32
    %c0_i32_1 = arith.constant 0 : i32
    return %c0_i32, %c0_i32_0 : i32, i32
  }
  func.func @transform_6(%arg0: i32) -> (i32, i32) {
    %c0_i32 = arith.constant 0 : i32
    %c0_i32_0 = arith.constant 0 : i32
    return %arg0, %c0_i32 : i32, i32
  }
}

module attributes {stable_mosaic.version = 11 : i64} {
  func.func @_attention_kernel(%arg0: i32, %arg1: memref<2x32xf32, #tpu.memory_space<vmem>>, %arg2: memref<8x2x32xf32, #tpu.memory_space<vmem>>, %arg3: memref<32x32xbf16, #tpu.memory_space<vmem>>, %arg4: memref<32x32xbf16, #tpu.memory_space<vmem>>, %arg5: memref<1x32xf32, #tpu.memory_space<vmem>>, %arg6: memref<1x32xf32, #tpu.memory_space<vmem>>, %arg7: memref<2x128xf32, #tpu.memory_space<vmem>>) attributes {dimension_semantics = [#tpu.dimension_semantics<parallel>], iteration_bounds = array<i64: 1>, scalar_prefetch = 0 : i64, scratch_operands = 0 : i64, tpu.core_type = #tpu.core_type<tc>, window_params = [{transform_indices = @transform_0, window_bounds = array<i64: 2, 32>}, {transform_indices = @transform_1, window_bounds = array<i64: 8, 2, 32>}, {pipeline_mode = #tpu.pipeline_mode<synchronous>, transform_indices = @transform_2, window_bounds = array<i64: 32, 32>}, {pipeline_mode = #tpu.pipeline_mode<synchronous>, transform_indices = @transform_3, window_bounds = array<i64: 32, 32>}, {pipeline_mode = #tpu.pipeline_mode<synchronous>, transform_indices = @transform_4, window_bounds = array<i64: 1, 32>}, {pipeline_mode = #tpu.pipeline_mode<synchronous>, transform_indices = @transform_5, window_bounds = array<i64: 1, 32>}, {transform_indices = @transform_6, window_bounds = array<i64: 2, 128>}]} {
    %c0 = arith.constant 0 : index
    %c0_0 = arith.constant 0 : index
    %0 = vector.load %arg1[%c0, %c0_0] : memref<2x32xf32, #tpu.memory_space<vmem>>, vector<2x32xf32>
    %1 = arith.truncf %0 : vector<2x32xf32> to vector<2x32xbf16>
    %c0_1 = arith.constant 0 : index
    %c0_2 = arith.constant 0 : index
    %2 = vector.load %arg3[%c0_1, %c0_2] : memref<32x32xbf16, #tpu.memory_space<vmem>>, vector<32x32xbf16>
    %cst = arith.constant dense<0.000000e+00> : vector<2x32xf32>
    %3 = tpu.matmul %1, %2, %cst {dimension_numbers = #tpu.dot_dimension_numbers<[1], [0], [0], [1], [0, 0, 1, 1], [], []>} : vector<2x32xbf16>, vector<32x32xbf16>, vector<2x32xf32> -> vector<2x32xf32>
    %c0_3 = arith.constant 0 : index
    %c0_4 = arith.constant 0 : index
    %4 = vector.load %arg5[%c0_3, %c0_4] : memref<1x32xf32, #tpu.memory_space<vmem>>, vector<1x32xf32>
    %5 = vector.broadcast %4 : vector<1x32xf32> to vector<2x32xf32>
    %6 = arith.addf %3, %5 : vector<2x32xf32>
    %c0_5 = arith.constant 0 : index
    %c0_6 = arith.constant 0 : index
    %c0_7 = arith.constant 0 : index
    %7 = vector.load %arg2[%c0_5, %c0_6, %c0_7] : memref<8x2x32xf32, #tpu.memory_space<vmem>>, vector<8x2x32xf32>
    %8 = vector.shape_cast %7 : vector<8x2x32xf32> to vector<16x32xf32>
    %9 = arith.truncf %8 : vector<16x32xf32> to vector<16x32xbf16>
    %c0_8 = arith.constant 0 : index
    %c0_9 = arith.constant 0 : index
    %10 = vector.load %arg4[%c0_8, %c0_9] : memref<32x32xbf16, #tpu.memory_space<vmem>>, vector<32x32xbf16>
    %cst_10 = arith.constant dense<0.000000e+00> : vector<16x32xf32>
    %11 = tpu.matmul %9, %10, %cst_10 {dimension_numbers = #tpu.dot_dimension_numbers<[1], [0], [0], [1], [0, 0, 1, 1], [], []>} : vector<16x32xbf16>, vector<32x32xbf16>, vector<16x32xf32> -> vector<16x32xf32>
    %12 = vector.shape_cast %11 : vector<16x32xf32> to vector<8x2x32xf32>
    %13 = vector.shape_cast %6 : vector<2x32xf32> to vector<1x2x32xf32>
    %14 = vector.broadcast %13 : vector<1x2x32xf32> to vector<8x2x32xf32>
    %15 = arith.addf %12, %14 : vector<8x2x32xf32>
    %16 = math.tanh %15 : vector<8x2x32xf32>
    %c0_11 = arith.constant 0 : index
    %c0_12 = arith.constant 0 : index
    %17 = vector.load %arg6[%c0_11, %c0_12] : memref<1x32xf32, #tpu.memory_space<vmem>>, vector<1x32xf32>
    %18 = vector.shape_cast %17 : vector<1x32xf32> to vector<1x1x32xf32>
    %19 = vector.broadcast %18 : vector<1x1x32xf32> to vector<8x2x32xf32>
    %20 = arith.mulf %16, %19 : vector<8x2x32xf32>
    %cst_13 = arith.constant dense<0.000000e+00> : vector<8x2xf32>
    %21 = vector.multi_reduction <add>, %20, %cst_13 [2] : vector<8x2x32xf32> to vector<8x2xf32>
    %cst_14 = arith.constant -1.000000e+30 : f32
    %22 = vector.broadcast %cst_14 : f32 to vector<120x2xf32>
    %23 = tpu.concatenate %21, %22 in 0 : vector<8x2xf32>, vector<120x2xf32> -> vector<128x2xf32>
    %24 = tpu.transpose %23, [1, 0] : vector<128x2xf32> -> vector<2x128xf32>
    %cst_15 = arith.constant dense<0xFF800000> : vector<2xf32>
    %25 = vector.multi_reduction <maximumf>, %24, %cst_15 [1] : vector<2x128xf32> to vector<2xf32>
    %26 = vector.shape_cast %25 : vector<2xf32> to vector<2x1xf32>
    %27 = vector.broadcast %26 : vector<2x1xf32> to vector<2x128xf32>
    %28 = arith.subf %24, %27 : vector<2x128xf32>
    %29 = math.exp %28 : vector<2x128xf32>
    %cst_16 = arith.constant dense<0.000000e+00> : vector<2xf32>
    %30 = vector.multi_reduction <add>, %29, %cst_16 [1] : vector<2x128xf32> to vector<2xf32>
    %31 = vector.shape_cast %30 : vector<2xf32> to vector<2x1xf32>
    %32 = tpu.reciprocal %31 {approx = true} : vector<2x1xf32> -> vector<2x1xf32>
    %33 = vector.broadcast %32 : vector<2x1xf32> to vector<2x128xf32>
    %34 = arith.mulf %29, %33 : vector<2x128xf32>
    %c0_17 = arith.constant 0 : index
    %c0_18 = arith.constant 0 : index
    %35 = vector.load %arg7[%c0_17, %c0_18] : memref<2x128xf32, #tpu.memory_space<vmem>>, vector<2x128xf32>
    tpu.vector_store %arg7[%c0_17, %c0_18], %34 {strides = array<i32>} : memref<2x128xf32, #tpu.memory_space<vmem>>, vector<2x128xf32>,
    return
  }
  func.func @transform_0(%arg0: i32) -> (i32, i32) {
    %c0_i32 = arith.constant 0 : i32
    %c0_i32_0 = arith.constant 0 : i32
    return %arg0, %c0_i32 : i32, i32
  }
  func.func @transform_1(%arg0: i32) -> (i32, i32, i32) {
    %c0_i32 = arith.constant 0 : i32
    %c0_i32_0 = arith.constant 0 : i32
    %c0_i32_1 = arith.constant 0 : i32
    return %c0_i32, %arg0, %c0_i32_0 : i32, i32, i32
  }
  func.func @transform_2(%arg0: i32) -> (i32, i32) {
    %c0_i32 = arith.constant 0 : i32
    %c0_i32_0 = arith.constant 0 : i32
    %c0_i32_1 = arith.constant 0 : i32
    return %c0_i32, %c0_i32_0 : i32, i32
  }
  func.func @transform_3(%arg0: i32) -> (i32, i32) {
    %c0_i32 = arith.constant 0 : i32
    %c0_i32_0 = arith.constant 0 : i32
    %c0_i32_1 = arith.constant 0 : i32
    return %c0_i32, %c0_i32_0 : i32, i32
  }
  func.func @transform_4(%arg0: i32) -> (i32, i32) {
    %c0_i32 = arith.constant 0 : i32
    %c0_i32_0 = arith.constant 0 : i32
    %c0_i32_1 = arith.constant 0 : i32
    return %c0_i32, %c0_i32_0 : i32, i32
  }
  func.func @transform_5(%arg0: i32) -> (i32, i32) {
    %c0_i32 = arith.constant 0 : i32
    %c0_i32_0 = arith.constant 0 : i32
    %c0_i32_1 = arith.constant 0 : i32
    return %c0_i32, %c0_i32_0 : i32, i32
  }
  func.func @transform_6(%arg0: i32) -> (i32, i32) {
    %c0_i32 = arith.constant 0 : i32
    %c0_i32_0 = arith.constant 0 : i32
    return %arg0, %c0_i32 : i32, i32
  }
}

</mosaic_0001>

<bundles_post_ra>
// kernel: tpu_custom_call.1
= control target key start
LH: loop header
LB: loop body
LE: loop exit
PB: predicated region body
PF: predicated region fallthrough
CT: control target
= control target key end

     0   :  { %11 = vsyncpa [#allocation3], 0  ;;  %s794_s0 = inlined_call_operand.hbm [shape: f32[2,32], index: 0, kind: input, shape index: {}]   ;;  %s795_s1 = inlined_call_operand.hbm [shape: f32[8,2,32], index: 1, kind: input, shape index: {}]   ;;  %s796_s2 = inlined_call_operand.hbm [shape: bf16[32,32], index: 2, kind: input, shape index: {}]   ;;  %s797_s3 = inlined_call_operand.hbm [shape: bf16[32,32], index: 3, kind: input, shape index: {}]   ;;  %s798_s4 = inlined_call_operand.vmem [shape: f32[1,32], index: 4, kind: input, shape index: {}]   ;;  %s799_s5 = inlined_call_operand.vmem [shape: f32[1,32], index: 5, kind: input, shape index: {}]   ;;  %s800_s6 = inlined_call_operand.hbm [shape: f32[2,128], index: 6, kind: output, shape index: {}]  }
   0x1   :  { %12 = vsyncpa [#allocation6], 0 }
   0x2   :  { %13 = vsyncpa [#allocation9], 0 }
   0x3   :  { %14 = vsyncpa [#allocation4], 0  ;;  %s664_s21 = smov [#allocation5]   ;;  %s546_s25 = scalar_lea.hbm %s795_s1, 256 }
   0x4   :  { %s30_s22 = sshll.u32 %s664_s21, 4  ;;  %p547_p0 = scmp.ne.s32.totalorder %s795_s1, %s546_s25  ;;  %s31_s22 = int_to_ptr.vmem [resolvable:$true] %s30_s22 }
   0x5   :  { %p550_p1 = scmp.lt.u32.totalorder %s546_s25, %s795_s1 }
   0x7   :  { %p552_p2 = pnand %p550_p1, %p547_p0 }
   0x9   :  { %555 = shalt.err (!%p552_p2)
}
   0xa   :  { %s556_s30 = scalar_lea.vmem %s31_s22, 256  ;;  %p561_p4 = scmp.lt.s32.totalorder %s31_s22, %s31_s22 }
   0xb   :  { %p557_p3 = scmp.ne.s32.totalorder %s31_s22, %s556_s30  ;;  %p562_p5 = scmp.lt.s32.totalorder %s556_s30, %s556_s30 }
   0xd   :  { %p563_p6 = por %p562_p5, %p561_p4 }
   0xf   :  { %p564_p7 = pnand %p563_p6, %p557_p3 }
  0x11   :  { %567 = shalt.err (!%p564_p7)
}
  0x12   :  { %s665_s7 = smov 32   ;;  %s666_s8 = smov 2  }
  0x13   :  { %36 = dma.hbm_to_vmem [thread:$0]  %s795_s1, 256, %s31_s22, [#allocation6], %s665_s7, %s665_s7, %s666_s8  }
  0x14   :  { %s667_s11 = smov [#allocation2]   ;;  %s668_s13 = smov [#allocation7]  }
  0x15   :  { %s21_s12 = sshll.u32 %s667_s11, 4  ;;  %s42_s14 = sshll.u32 %s668_s13, 4  ;;  %s22_s12 = int_to_ptr.vmem [resolvable:$true] %s21_s12  ;;  %s43_s14 = int_to_ptr.vmem [resolvable:$true] %s42_s14 }
  0x16   :  { %s568_s17 = scalar_lea.hbm %s794_s0, 32 }
  0x17   :  { %p569_p8 = scmp.ne.s32.totalorder %s794_s0, %s568_s17  ;;  %p572_p9 = scmp.lt.u32.totalorder %s568_s17, %s794_s0 }
  0x19   :  { %p574_p10 = pnand %p572_p9, %p569_p8 }
  0x1b   :  { %577 = shalt.err (!%p574_p10)
}
  0x1c   :  { %s578_s1 = scalar_lea.vmem %s22_s12, 32  ;;  %p583_p12 = scmp.lt.s32.totalorder %s22_s12, %s22_s12 }
  0x1d   :  { %p579_p11 = scmp.ne.s32.totalorder %s22_s12, %s578_s1  ;;  %p584_p13 = scmp.lt.s32.totalorder %s578_s1, %s578_s1 }
  0x1f   :  { %p585_p0 = por %p584_p13, %p583_p12 }
  0x21   :  { %p586_p1 = pnand %p585_p0, %p579_p11 }
  0x23   :  { %589 = shalt.err (!%p586_p1)
}
  0x24   :  { %24 = dma.hbm_to_vmem [thread:$0]  %s794_s0, 32, %s22_s12, [#allocation3]  }
  0x25   :  { %s590_s26 = scalar_lea.hbm %s796_s2, 256 }
  0x26   :  { %p591_p2 = scmp.ne.s32.totalorder %s796_s2, %s590_s26  ;;  %p594_p3 = scmp.lt.u32.totalorder %s590_s26, %s796_s2 }
  0x28   :  { %p596_p4 = pnand %p594_p3, %p591_p2 }
  0x2a   :  { %599 = shalt.err (!%p596_p4)
}
  0x2b   :  { %s600_s7 = scalar_lea.vmem %s43_s14, 256  ;;  %p605_p6 = scmp.lt.s32.totalorder %s43_s14, %s43_s14 }
  0x2c   :  { %p601_p5 = scmp.ne.s32.totalorder %s43_s14, %s600_s7  ;;  %p606_p7 = scmp.lt.s32.totalorder %s600_s7, %s600_s7 }
  0x2e   :  { %p607_p8 = por %p606_p7, %p605_p6 }
  0x30   :  { %p608_p9 = pnand %p607_p8, %p601_p5 }
  0x32   :  { %611 = shalt.err (!%p608_p9)
}
  0x33   :  { %s669_s0 = smov 64   ;;  %s670_s8 = smov 4  }
  0x34   :  { %48 = dma.hbm_to_vmem [thread:$0]  %s796_s2, 256, %s43_s14, [#allocation6], %s669_s0, %s669_s0, %s670_s8  }
  0x35   :  { %s671_s11 = smov [#allocation8]   ;;  %s612_s16 = scalar_lea.hbm %s797_s3, 256 }
  0x36   :  { %s54_s12 = sshll.u32 %s671_s11, 4  ;;  %p613_p10 = scmp.ne.s32.totalorder %s797_s3, %s612_s16  ;;  %s55_s12 = int_to_ptr.vmem [resolvable:$true] %s54_s12 }
  0x37   :  { %p616_p11 = scmp.lt.u32.totalorder %s612_s16, %s797_s3 }
  0x39   :  { %p618_p12 = pnand %p616_p11, %p613_p10 }
  0x3b   :  { %621 = shalt.err (!%p618_p12)
}
  0x3c   :  { %s622_s21 = scalar_lea.vmem %s55_s12, 256  ;;  %p627_p0 = scmp.lt.s32.totalorder %s55_s12, %s55_s12 }
  0x3d   :  { %p623_p13 = scmp.ne.s32.totalorder %s55_s12, %s622_s21  ;;  %p628_p1 = scmp.lt.s32.totalorder %s622_s21, %s622_s21 }
  0x3f   :  { %p629_p2 = por %p628_p1, %p627_p0 }
  0x41   :  { %p630_p3 = pnand %p629_p2, %p623_p13 }
  0x43   :  { %633 = shalt.err (!%p630_p3)
}
  0x44   :  { %60 = dma.hbm_to_vmem [thread:$0]  %s797_s3, 256, %s55_s12, [#allocation9], %s669_s0, %s669_s0, %s670_s8  }
  0x45   :  { %656 = dma.done.wait [#allocation3], 32  }
  0x46   :  { %657 = vsyncadd [#allocation3], 4294967264 }
  0x47   :  { %658 = dma.done.wait [#allocation6], 512  }
  0x48   :  { %659 = vsyncadd [#allocation6], 4294966784 }
  0x49   :  { %660 = dma.done.wait [#allocation9], 256  }
  0x4a   :  { %661 = vsyncadd [#allocation9], 4294967040  ;;  %v672_v0 = vmov 0.0   ;;  %vm673_vm0 = vmmov 0   ;;  %v674_v1 = vmov 1983009808   ;;  %v168_v3 = vlaneseq }
  0x4b   :  { %493 = vmatprep.subr.bf16.mxu0 %v672_v0  ;;  %501 = vmatprep.subr.bf16.mxu1 %v672_v0  ;;  %v166_v2 = vunpack.c.l.s4 %v674_v1  ;;  %v522_v6 = vld [vmem:[#allocation7] sm:$0xff]   ;;  %v523_v7 = vld [vmem:[#allocation8] sm:$0xff]   ;;  %v524_v8 = vld [vmem:[#allocation7 + $0x8] sm:$0xff]   ;;  %vm103_vm1 = vcmask 261120   ;;  %vm335_vm2 = vcmask 254976   ;;  %vm402_vm3 = vcmask 1041409  }
  0x4c   :  { %497 = vmatprep.mubr.msk.bf16.mxu0 %vm673_vm0, %v672_v0  ;;  %505 = vmatprep.mubr.msk.bf16.mxu1 %vm673_vm0, %v672_v0  ;;  %v761_v5 = vshrl.u32 %v168_v3, 7  ;;  %v525_v9 = vld [vmem:[#allocation8 + $0x8] sm:$0xff]   ;;  %v78_v11 = vld [vmem:[#allocation2] sm:$0x3]  ;;  %v147_v12 = vld [vmem:[#allocation5] sm:$0x3] }
  0x4d   :  { %v167_v4 = vunpack.c.0.s8 %v166_v2  ;;  %494 = vmatpush3.bf16.msra.mxu0 %v522_v6  ;;  %502 = vmatpush3.bf16.msra.mxu1 %v523_v7  ;;  %v148_v13 = vld [vmem:[#allocation5 + $0x2] sm:$0x3]  ;;  %v79_v14 = vpack.c.bf16 %v78_v11, %v78_v11  ;;  %v149_v15 = vld [vmem:[#allocation5 + $0x4] sm:$0x3]  ;;  %v150_v16 = vld [vmem:[#allocation5 + $0x6] sm:$0x3] }
  0x4e   :  { %495 = vmatprep.subr.bf16.mxu0 %v672_v0  ;;  %503 = vmatprep.subr.bf16.mxu1 %v672_v0  ;;  %v151_v17 = vld [vmem:[#allocation5 + $0x8] sm:$0x3]  ;;  %v163_v18 = vcombine.low %v147_v12, %v148_v13  ;;  %v152_v19 = vld [vmem:[#allocation5 + $0xa] sm:$0x3]  ;;  %v153_v20 = vld [vmem:[#allocation5 + $0xc] sm:$0x3]  ;;  %v164_v22 = vcombine.low %v149_v15, %v150_v16 }
  0x4f   :  { %v170_v10 = vsub.s32 %v167_v4, %v761_v5  ;;  %v154_v21 = vld [vmem:[#allocation5 + $0xe] sm:$0x3]  ;;  %v180_v24 = vcombine.low %v151_v17, %v152_v19  ;;  %v479_v34 = vld [vmem:[%s798_s4] ss:$0 sm:$0xff]  ;;  %vm404_vm4 = vcmask 1042434   ;;  %vm406_vm5 = vcmask 1043459  }
  0x50   :  { %v181_v25 = vcombine.low %v153_v20, %v154_v21  ;;  %v486_v60 = vld [vmem:[%s799_s5] ss:$0 sm:$0xff]  ;;  %vm408_vm6 = vcmask 1044484   ;;  %vm410_vm7 = vcmask 1045509   ;;  %vm412_vm8 = vcmask 1046534   ;;  %s676_s5 = smov [#allocation10]  }
  0x51   :  { %496 = vmatpush3.bf16.msra.mxu0 %v524_v8  ;;  %504 = vmatpush3.bf16.msra.mxu1 %v525_v9  ;;  %v171_v23 = vrot.slane %v163_v18, %v170_v10  ;;  %v178_v26 = vrot.slane %v164_v22, %v170_v10  ;;  %v188_v27 = vrot.slane %v180_v24, %v170_v10  ;;  %vm414_vm9 = vcmask 1047559   ;;  %s468_s23 = sshll.u32 %s676_s5, 4  ;;  %s469_s23 = int_to_ptr.vmem [resolvable:$true] %s468_s23 }
  0x52   :  { %v195_v28 = vrot.slane %v181_v25, %v170_v10  ;;  %vm449_vm10 = vcmask 1041408   ;;  %s634_s24 = scalar_lea.vmem %s469_s23, 32  ;;  %p639_p5 = scmp.lt.s32.totalorder %s469_s23, %s469_s23 }
  0x53   :  { %v179_v29 = vcombine.low %v171_v23, %v178_v26  ;;  %v369_v23 = vand.u32 127, %v168_v3  ;;  %p635_p4 = scmp.ne.s32.totalorder %s469_s23, %s634_s24  ;;  %p640_p6 = scmp.lt.s32.totalorder %s634_s24, %s634_s24 }
  0x54   :  { %498 = vmatmul.mubr.msk.bf16.vlgmr.msra.gmra.mrb[0].mxu0 %vm103_vm1, %v79_v14  ;;  %v196_v30 = vcombine.low %v188_v27, %v195_v28 }
  0x55   :  { %v372_v25 = vsub.s32 %v369_v23, %v761_v5  ;;  %p641_p7 = por %p640_p6, %p639_p5 }
  0x56   :  { %v199_v31 = vpack.c.bf16 %v196_v30, %v179_v29 }
  0x57   :  { %p642_p8 = pnand %p641_p7, %p635_p4 }
  0x58   :  { %506 = vmatmul.mubr.msk.bf16.vlgmr.msra.gmra.mrb[0].mxu1 %vm103_vm1, %v199_v31 }
 0x127   :  { %v141_v32 = vpop.f32.mrb[0].mxu0 }
 0x128   :  { %v499_v33 = vpop.f32.mrb[1].mxu0  ;;  %v142_v37 = vadd.f32 %v479_v34, %v141_v32 }
 0x129   :  { %v144_v35 = vpop.f32.mrb[2].mxu0 }
 0x12a   :  { %v500_v36 = vpop.f32.mrb[3].mxu0 }
 0x12b   :  { %v253_v38 = vpop.f32.mrb[0].mxu1 }
 0x12c   :  { %v262_v39 = vcombine.high %v253_v38, %v253_v38  ;;  %v269_v40 = vrot.slane %v253_v38, %v170_v10  ;;  %v507_v41 = vpop.f32.mrb[1].mxu1 }
 0x12d   :  { %v256_v42 = vpop.f32.mrb[2].mxu1 }
 0x12e   :  { %v276_v43 = vrot.slane %v262_v39, %v170_v10  ;;  %v277_v44 = vcombine.high %v269_v40, %v269_v40  ;;  %v304_v45 = vadd.f32 %v269_v40, %v142_v37  ;;  %v279_v46 = vcombine.high %v256_v42, %v256_v42  ;;  %v508_v47 = vpop.f32.mrb[3].mxu1 }
 0x12f   :  { %v286_v48 = vrot.slane %v256_v42, %v170_v10 }
 0x130   :  { %v278_v49 = vcombine.high %v276_v43, %v276_v43  ;;  %v305_v50 = vadd.f32 %v277_v44, %v142_v37  ;;  %v306_v51 = vadd.f32 %v276_v43, %v142_v37  ;;  %526 = vtanh.f32 %v304_v45 }
 0x131   :  { %v293_v52 = vrot.slane %v279_v46, %v170_v10  ;;  %v294_v53 = vcombine.high %v286_v48, %v286_v48  ;;  %v308_v54 = vadd.f32 %v286_v48, %v142_v37  ;;  %v675_v46 = vmov -1e+30  }
 0x132   :  { %v307_v55 = vadd.f32 %v278_v49, %v142_v37  ;;  %528 = vtanh.f32 %v305_v50 }
 0x133   :  { %530 = vtanh.f32 %v306_v51  ;;  %v295_v56 = vcombine.high %v293_v52, %v293_v52  ;;  %v309_v57 = vadd.f32 %v294_v53, %v142_v37  ;;  %v310_v58 = vadd.f32 %v293_v52, %v142_v37 }
 0x134   :  { %532 = vtanh.f32 %v307_v55 }
 0x135   :  { %v311_v59 = vadd.f32 %v295_v56, %v142_v37  ;;  %534 = vtanh.f32 %v308_v54 }
 0x136   :  { %536 = vtanh.f32 %v309_v57 }
 0x137   :  { %538 = vtanh.f32 %v310_v58 }
 0x138   :  { %540 = vtanh.f32 %v311_v59 }
 0x13a   :  { %v527_v61 = vpop.eup %526 }
 0x13b   :  { %v327_v62 = vmul.f32 %v527_v61, %v486_v60 }
 0x13c   :  { %v529_v63 = vpop.eup %528 }
 0x13d   :  { %v531_v0 = vpop.eup %530  ;;  %v336_v1 = vsel %vm335_vm2, %v327_v62, 0.0  ;;  %v328_v2 = vmul.f32 %v529_v63, %v486_v60 }
 0x13e   :  { %v533_v4 = vpop.eup %532  ;;  %337 = vadd.xlane.f32.xlu0 %v336_v1  ;;  %v329_v6 = vmul.f32 %v531_v0, %v486_v60 }
 0x13f   :  { %v535_v7 = vpop.eup %534  ;;  %v330_v9 = vmul.f32 %v533_v4, %v486_v60  ;;  %v339_v11 = vsel %vm335_vm2, %v328_v2, 0.0 }
 0x140   :  { %v342_v8 = vsel %vm335_vm2, %v329_v6, 0.0  ;;  %v537_v10 = vpop.eup %536  ;;  %v331_v12 = vmul.f32 %v535_v7, %v486_v60 }
 0x141   :  { %343 = vadd.xlane.f32.xlu1 %v342_v8  ;;  %v539_v13 = vpop.eup %538  ;;  %v345_v14 = vsel %vm335_vm2, %v330_v9, 0.0  ;;  %v332_v15 = vmul.f32 %v537_v10, %v486_v60 }
 0x142   :  { %340 = vadd.xlane.f32.xlu0 %v339_v11  ;;  %v541_v16 = vpop.eup %540  ;;  %v348_v17 = vsel %vm335_vm2, %v331_v12, 0.0  ;;  %v333_v18 = vmul.f32 %v539_v13, %v486_v60 }
 0x143   :  { %v351_v19 = vsel %vm335_vm2, %v332_v15, 0.0  ;;  %v334_v20 = vmul.f32 %v541_v16, %v486_v60 }
 0x144   :  { %v354_v21 = vsel %vm335_vm2, %v333_v18, 0.0 }
 0x145   :  { %346 = vadd.xlane.f32.xlu1 %v345_v14  ;;  %v357_v22 = vsel %vm335_vm2, %v334_v20, 0.0 }
 0x146   :  { %349 = vadd.xlane.f32.xlu0 %v348_v17 }
 0x149   :  { %352 = vadd.xlane.f32.xlu1 %v351_v19 }
 0x14a   :  { %355 = vadd.xlane.f32.xlu0 %v354_v21 }
 0x14d   :  { %358 = vadd.xlane.f32.xlu1 %v357_v22 }
 0x1cb   :  { %v338_v24 = vpop.xlane.xlu0 %337 }
 0x1cc   :  { %v373_v28 = vrot.slane %v338_v24, %v372_v25 }
 0x1ce   :  { %v344_v26 = vpop.xlane.xlu1 %343 }
 0x1cf   :  { %v341_v27 = vpop.xlane.xlu0 %340  ;;  %v381_v30 = vrot.slane %v344_v26, %v372_v25 }
 0x1d0   :  { %v377_v29 = vrot.slane %v341_v27, %v372_v25 }
 0x1d2   :  { %v403_v31 = vsel %vm402_vm3, %v377_v29, %v373_v28  ;;  %v347_v32 = vpop.xlane.xlu1 %346 }
 0x1d3   :  { %v385_v33 = vrot.slane %v347_v32, %v372_v25  ;;  %v405_v34 = vsel %vm404_vm4, %v381_v30, %v403_v31  ;;  %v350_v35 = vpop.xlane.xlu0 %349 }
 0x1d4   :  { %v389_v36 = vrot.slane %v350_v35, %v372_v25 }
 0x1d5   :  { %v407_v37 = vsel %vm406_vm5, %v385_v33, %v405_v34 }
 0x1d6   :  { %v409_v3 = vsel %vm408_vm6, %v389_v36, %v407_v37  ;;  %v353_v38 = vpop.xlane.xlu1 %352 }
 0x1d7   :  { %v393_v5 = vrot.slane %v353_v38, %v372_v25  ;;  %v356_v39 = vpop.xlane.xlu0 %355 }
 0x1d8   :  { %v397_v40 = vrot.slane %v356_v39, %v372_v25 }
 0x1d9   :  { %v411_v41 = vsel %vm410_vm7, %v393_v5, %v409_v3 }
 0x1da   :  { %v359_v42 = vpop.xlane.xlu1 %358  ;;  %v413_v43 = vsel %vm412_vm8, %v397_v40, %v411_v41 }
 0x1db   :  { %v401_v44 = vrot.slane %v359_v42, %v372_v25 }
 0x1dd   :  { %v415_v45 = vsel %vm414_vm9, %v401_v44, %v413_v43 }
 0x1de   :  { %417 = vxpose.xlu0.b32.start [1/16] (narrow) %v415_v45, 8 }
 0x1e2   :  { %418 = vxpose.xlu0.b32.cont [2/16] (narrow) %v675_v46, 8 }
 0x1e6   :  { %419 = vxpose.xlu0.b32.cont [3/16] (narrow) %v675_v46, 8 }
 0x1ea   :  { %420 = vxpose.xlu0.b32.cont [4/16] (narrow) %v675_v46, 8 }
 0x1ee   :  { %421 = vxpose.xlu0.b32.cont [5/16] (narrow) %v675_v46, 8 }
 0x1f2   :  { %422 = vxpose.xlu0.b32.cont [6/16] (narrow) %v675_v46, 8 }
 0x1f6   :  { %423 = vxpose.xlu0.b32.cont [7/16] (narrow) %v675_v46, 8 }
 0x1fa   :  { %424 = vxpose.xlu0.b32.cont [8/16] (narrow) %v675_v46, 8 }
 0x1fe   :  { %425 = vxpose.xlu0.b32.cont [9/16] (narrow) %v675_v46, 8 }
 0x202   :  { %426 = vxpose.xlu0.b32.cont [10/16] (narrow) %v675_v46, 8 }
 0x206   :  { %427 = vxpose.xlu0.b32.cont [11/16] (narrow) %v675_v46, 8 }
 0x20a   :  { %428 = vxpose.xlu0.b32.cont [12/16] (narrow) %v675_v46, 8 }
 0x20e   :  { %429 = vxpose.xlu0.b32.cont [13/16] (narrow) %v675_v46, 8 }
 0x212   :  { %430 = vxpose.xlu0.b32.cont [14/16] (narrow) %v675_v46, 8 }
 0x216   :  { %431 = vxpose.xlu0.b32.cont [15/16] (narrow) %v675_v46, 8 }
 0x21a   :  { %432 = vxpose.xlu0.b32.end [16/16] (narrow) %v675_v46, 8 }
 0x25e   :  { %v433_v47 = vpop.trf.xlu0 }
 0x25f   :  { %v450_v48 = vsel %vm449_vm10, %v433_v47, -inf }
 0x260   :  { %451 = vmax.xlane.f32.xlu1 %v450_v48 }
 0x2ed   :  { %v452_v49 = vpop.xlane.xlu1 %451 }
 0x2ee   :  { %v453_v50 = vsub.f32 %v433_v47, %v452_v49 }
 0x2f0   :  { %v454_v51 = vmul.f32 1.442695, %v453_v50 }
 0x2f2   :  { %542 = vpow2.f32 %v454_v51 }
 0x2fc   :  { %v543_v52 = vpop.eup %542 }
 0x2fd   :  { %v456_v53 = vsel %vm449_vm10, %v543_v52, 0.0 }
 0x2fe   :  { %457 = vadd.xlane.f32.xlu1 %v456_v53 }
 0x38b   :  { %v458_v54 = vpop.xlane.xlu1 %457 }
 0x38c   :  { %544 = vrcp.f32 %v458_v54 }
 0x396   :  { %v545_v55 = vpop.eup %544 }
 0x397   :  { %v460_v56 = vmul.f32 %v545_v55, %v543_v52 }
 0x399   :  { %461 = vst [vmem:[#allocation10] sm:$0x3] %v460_v56 }
 0x39a   :  { %645 = shalt.err (!%p642_p8)
}
 0x39b   :  { %s646_s27 = scalar_lea.hbm %s800_s6, 32 }
 0x39c   :  { %p647_p9 = scmp.ne.s32.totalorder %s800_s6, %s646_s27  ;;  %p650_p10 = scmp.lt.u32.totalorder %s646_s27, %s800_s6 }
 0x39e   :  { %p652_p11 = pnand %p650_p10, %p647_p9 }
 0x3a0   :  { %655 = shalt.err (!%p652_p11)
}
 0x3a1   :  { %471 = dma.vmem_to_hbm [thread:$0]  %s469_s23, 32, %s800_s6, [#allocation4]  }
 0x3a2   :  { %662 = dma.done.wait [#allocation4], 32  }
 0x3a3   :  { %663 = vsyncadd [#allocation4], 4294967264 }
 0x3a4   :  { %475 = vsyncpa [#allocation3], 1 }
 0x3a5   :  { %476 = vsyncpa [#allocation6], 1 }
 0x3a6   :  { %477 = vsyncpa [#allocation9], 1 }
 0x3a7   :  { %478 = vsyncpa [#allocation4], 1 }

// kernel: tpu_custom_call.1
= control target key start
LH: loop header
LB: loop body
LE: loop exit
PB: predicated region body
PF: predicated region fallthrough
CT: control target
= control target key end

     0   :  { %11 = vsyncpa [#allocation3], 0  ;;  %s794_s0 = inlined_call_operand.hbm [shape: f32[2,32], index: 0, kind: input, shape index: {}]   ;;  %s795_s1 = inlined_call_operand.hbm [shape: f32[8,2,32], index: 1, kind: input, shape index: {}]   ;;  %s796_s2 = inlined_call_operand.hbm [shape: bf16[32,32], index: 2, kind: input, shape index: {}]   ;;  %s797_s3 = inlined_call_operand.hbm [shape: bf16[32,32], index: 3, kind: input, shape index: {}]   ;;  %s798_s4 = inlined_call_operand.vmem [shape: f32[1,32], index: 4, kind: input, shape index: {}]   ;;  %s799_s5 = inlined_call_operand.vmem [shape: f32[1,32], index: 5, kind: input, shape index: {}]   ;;  %s800_s6 = inlined_call_operand.hbm [shape: f32[2,128], index: 6, kind: output, shape index: {}]  }
   0x1   :  { %12 = vsyncpa [#allocation6], 0 }
   0x2   :  { %13 = vsyncpa [#allocation9], 0 }
   0x3   :  { %14 = vsyncpa [#allocation4], 0  ;;  %s664_s21 = smov [#allocation5]   ;;  %s546_s25 = scalar_lea.hbm %s795_s1, 256 }
   0x4   :  { %s30_s22 = sshll.u32 %s664_s21, 4  ;;  %p547_p0 = scmp.ne.s32.totalorder %s795_s1, %s546_s25  ;;  %s31_s22 = int_to_ptr.vmem [resolvable:$true] %s30_s22 }
   0x5   :  { %p550_p1 = scmp.lt.u32.totalorder %s546_s25, %s795_s1 }
   0x7   :  { %p552_p2 = pnand %p550_p1, %p547_p0 }
   0x9   :  { %555 = shalt.err (!%p552_p2)
}
   0xa   :  { %s556_s30 = scalar_lea.vmem %s31_s22, 256  ;;  %p561_p4 = scmp.lt.s32.totalorder %s31_s22, %s31_s22 }
   0xb   :  { %p557_p3 = scmp.ne.s32.totalorder %s31_s22, %s556_s30  ;;  %p562_p5 = scmp.lt.s32.totalorder %s556_s30, %s556_s30 }
   0xd   :  { %p563_p6 = por %p562_p5, %p561_p4 }
   0xf   :  { %p564_p7 = pnand %p563_p6, %p557_p3 }
  0x11   :  { %567 = shalt.err (!%p564_p7)
}
  0x12   :  { %s665_s7 = smov 32   ;;  %s666_s8 = smov 2  }
  0x13   :  { %36 = dma.hbm_to_vmem [thread:$0]  %s795_s1, 256, %s31_s22, [#allocation6], %s665_s7, %s665_s7, %s666_s8  }
  0x14   :  { %s667_s11 = smov [#allocation2]   ;;  %s668_s13 = smov [#allocation7]  }
  0x15   :  { %s21_s12 = sshll.u32 %s667_s11, 4  ;;  %s42_s14 = sshll.u32 %s668_s13, 4  ;;  %s22_s12 = int_to_ptr.vmem [resolvable:$true] %s21_s12  ;;  %s43_s14 = int_to_ptr.vmem [resolvable:$true] %s42_s14 }
  0x16   :  { %s568_s17 = scalar_lea.hbm %s794_s0, 32 }
  0x17   :  { %p569_p8 = scmp.ne.s32.totalorder %s794_s0, %s568_s17  ;;  %p572_p9 = scmp.lt.u32.totalorder %s568_s17, %s794_s0 }
  0x19   :  { %p574_p10 = pnand %p572_p9, %p569_p8 }
  0x1b   :  { %577 = shalt.err (!%p574_p10)
}
  0x1c   :  { %s578_s1 = scalar_lea.vmem %s22_s12, 32  ;;  %p583_p12 = scmp.lt.s32.totalorder %s22_s12, %s22_s12 }
  0x1d   :  { %p579_p11 = scmp.ne.s32.totalorder %s22_s12, %s578_s1  ;;  %p584_p13 = scmp.lt.s32.totalorder %s578_s1, %s578_s1 }
  0x1f   :  { %p585_p0 = por %p584_p13, %p583_p12 }
  0x21   :  { %p586_p1 = pnand %p585_p0, %p579_p11 }
  0x23   :  { %589 = shalt.err (!%p586_p1)
}
  0x24   :  { %24 = dma.hbm_to_vmem [thread:$0]  %s794_s0, 32, %s22_s12, [#allocation3]  }
  0x25   :  { %s590_s26 = scalar_lea.hbm %s796_s2, 256 }
  0x26   :  { %p591_p2 = scmp.ne.s32.totalorder %s796_s2, %s590_s26  ;;  %p594_p3 = scmp.lt.u32.totalorder %s590_s26, %s796_s2 }
  0x28   :  { %p596_p4 = pnand %p594_p3, %p591_p2 }
  0x2a   :  { %599 = shalt.err (!%p596_p4)
}
  0x2b   :  { %s600_s7 = scalar_lea.vmem %s43_s14, 256  ;;  %p605_p6 = scmp.lt.s32.totalorder %s43_s14, %s43_s14 }
  0x2c   :  { %p601_p5 = scmp.ne.s32.totalorder %s43_s14, %s600_s7  ;;  %p606_p7 = scmp.lt.s32.totalorder %s600_s7, %s600_s7 }
  0x2e   :  { %p607_p8 = por %p606_p7, %p605_p6 }
  0x30   :  { %p608_p9 = pnand %p607_p8, %p601_p5 }
  0x32   :  { %611 = shalt.err (!%p608_p9)
}
  0x33   :  { %s669_s0 = smov 64   ;;  %s670_s8 = smov 4  }
  0x34   :  { %48 = dma.hbm_to_vmem [thread:$0]  %s796_s2, 256, %s43_s14, [#allocation6], %s669_s0, %s669_s0, %s670_s8  }
  0x35   :  { %s671_s11 = smov [#allocation8]   ;;  %s612_s16 = scalar_lea.hbm %s797_s3, 256 }
  0x36   :  { %s54_s12 = sshll.u32 %s671_s11, 4  ;;  %p613_p10 = scmp.ne.s32.totalorder %s797_s3, %s612_s16  ;;  %s55_s12 = int_to_ptr.vmem [resolvable:$true] %s54_s12 }
  0x37   :  { %p616_p11 = scmp.lt.u32.totalorder %s612_s16, %s797_s3 }
  0x39   :  { %p618_p12 = pnand %p616_p11, %p613_p10 }
  0x3b   :  { %621 = shalt.err (!%p618_p12)
}
  0x3c   :  { %s622_s21 = scalar_lea.vmem %s55_s12, 256  ;;  %p627_p0 = scmp.lt.s32.totalorder %s55_s12, %s55_s12 }
  0x3d   :  { %p623_p13 = scmp.ne.s32.totalorder %s55_s12, %s622_s21  ;;  %p628_p1 = scmp.lt.s32.totalorder %s622_s21, %s622_s21 }
  0x3f   :  { %p629_p2 = por %p628_p1, %p627_p0 }
  0x41   :  { %p630_p3 = pnand %p629_p2, %p623_p13 }
  0x43   :  { %633 = shalt.err (!%p630_p3)
}
  0x44   :  { %60 = dma.hbm_to_vmem [thread:$0]  %s797_s3, 256, %s55_s12, [#allocation9], %s669_s0, %s669_s0, %s670_s8  }
  0x45   :  { %656 = dma.done.wait [#allocation3], 32  }
  0x46   :  { %657 = vsyncadd [#allocation3], 4294967264 }
  0x47   :  { %658 = dma.done.wait [#allocation6], 512  }
  0x48   :  { %659 = vsyncadd [#allocation6], 4294966784 }
  0x49   :  { %660 = dma.done.wait [#allocation9], 256  }
  0x4a   :  { %661 = vsyncadd [#allocation9], 4294967040  ;;  %v672_v0 = vmov 0.0   ;;  %vm673_vm0 = vmmov 0   ;;  %v674_v1 = vmov 1983009808   ;;  %v168_v3 = vlaneseq }
  0x4b   :  { %493 = vmatprep.subr.bf16.mxu0 %v672_v0  ;;  %501 = vmatprep.subr.bf16.mxu1 %v672_v0  ;;  %v166_v2 = vunpack.c.l.s4 %v674_v1  ;;  %v522_v6 = vld [vmem:[#allocation7] sm:$0xff]   ;;  %v523_v7 = vld [vmem:[#allocation8] sm:$0xff]   ;;  %v524_v8 = vld [vmem:[#allocation7 + $0x8] sm:$0xff]   ;;  %vm103_vm1 = vcmask 261120   ;;  %vm335_vm2 = vcmask 254976   ;;  %vm402_vm3 = vcmask 1041409  }
  0x4c   :  { %497 = vmatprep.mubr.msk.bf16.mxu0 %vm673_vm0, %v672_v0  ;;  %505 = vmatprep.mubr.msk.bf16.mxu1 %vm673_vm0, %v672_v0  ;;  %v761_v5 = vshrl.u32 %v168_v3, 7  ;;  %v525_v9 = vld [vmem:[#allocation8 + $0x8] sm:$0xff]   ;;  %v78_v11 = vld [vmem:[#allocation2] sm:$0x3]  ;;  %v147_v12 = vld [vmem:[#allocation5] sm:$0x3] }
  0x4d   :  { %v167_v4 = vunpack.c.0.s8 %v166_v2  ;;  %494 = vmatpush3.bf16.msra.mxu0 %v522_v6  ;;  %502 = vmatpush3.bf16.msra.mxu1 %v523_v7  ;;  %v148_v13 = vld [vmem:[#allocation5 + $0x2] sm:$0x3]  ;;  %v79_v14 = vpack.c.bf16 %v78_v11, %v78_v11  ;;  %v149_v15 = vld [vmem:[#allocation5 + $0x4] sm:$0x3]  ;;  %v150_v16 = vld [vmem:[#allocation5 + $0x6] sm:$0x3] }
  0x4e   :  { %495 = vmatprep.subr.bf16.mxu0 %v672_v0  ;;  %503 = vmatprep.subr.bf16.mxu1 %v672_v0  ;;  %v151_v17 = vld [vmem:[#allocation5 + $0x8] sm:$0x3]  ;;  %v163_v18 = vcombine.low %v147_v12, %v148_v13  ;;  %v152_v19 = vld [vmem:[#allocation5 + $0xa] sm:$0x3]  ;;  %v153_v20 = vld [vmem:[#allocation5 + $0xc] sm:$0x3]  ;;  %v164_v22 = vcombine.low %v149_v15, %v150_v16 }
  0x4f   :  { %v170_v10 = vsub.s32 %v167_v4, %v761_v5  ;;  %v154_v21 = vld [vmem:[#allocation5 + $0xe] sm:$0x3]  ;;  %v180_v24 = vcombine.low %v151_v17, %v152_v19  ;;  %v479_v34 = vld [vmem:[%s798_s4] ss:$0 sm:$0xff]  ;;  %vm404_vm4 = vcmask 1042434   ;;  %vm406_vm5 = vcmask 1043459  }
  0x50   :  { %v181_v25 = vcombine.low %v153_v20, %v154_v21  ;;  %v486_v60 = vld [vmem:[%s799_s5] ss:$0 sm:$0xff]  ;;  %vm408_vm6 = vcmask 1044484   ;;  %vm410_vm7 = vcmask 1045509   ;;  %vm412_vm8 = vcmask 1046534   ;;  %s676_s5 = smov [#allocation10]  }
  0x51   :  { %496 = vmatpush3.bf16.msra.mxu0 %v524_v8  ;;  %504 = vmatpush3.bf16.msra.mxu1 %v525_v9  ;;  %v171_v23 = vrot.slane %v163_v18, %v170_v10  ;;  %v178_v26 = vrot.slane %v164_v22, %v170_v10  ;;  %v188_v27 = vrot.slane %v180_v24, %v170_v10  ;;  %vm414_vm9 = vcmask 1047559   ;;  %s468_s23 = sshll.u32 %s676_s5, 4  ;;  %s469_s23 = int_to_ptr.vmem [resolvable:$true] %s468_s23 }
  0x52   :  { %v195_v28 = vrot.slane %v181_v25, %v170_v10  ;;  %vm449_vm10 = vcmask 1041408   ;;  %s634_s24 = scalar_lea.vmem %s469_s23, 32  ;;  %p639_p5 = scmp.lt.s32.totalorder %s469_s23, %s469_s23 }
  0x53   :  { %v179_v29 = vcombine.low %v171_v23, %v178_v26  ;;  %v369_v23 = vand.u32 127, %v168_v3  ;;  %p635_p4 = scmp.ne.s32.totalorder %s469_s23, %s634_s24  ;;  %p640_p6 = scmp.lt.s32.totalorder %s634_s24, %s634_s24 }
  0x54   :  { %498 = vmatmul.mubr.msk.bf16.vlgmr.msra.gmra.mrb[0].mxu0 %vm103_vm1, %v79_v14  ;;  %v196_v30 = vcombine.low %v188_v27, %v195_v28 }
  0x55   :  { %v372_v25 = vsub.s32 %v369_v23, %v761_v5  ;;  %p641_p7 = por %p640_p6, %p639_p5 }
  0x56   :  { %v199_v31 = vpack.c.bf16 %v196_v30, %v179_v29 }
  0x57   :  { %p642_p8 = pnand %p641_p7, %p635_p4 }
  0x58   :  { %506 = vmatmul.mubr.msk.bf16.vlgmr.msra.gmra.mrb[0].mxu1 %vm103_vm1, %v199_v31 }
 0x127   :  { %v141_v32 = vpop.f32.mrb[0].mxu0 }
 0x128   :  { %v499_v33 = vpop.f32.mrb[1].mxu0  ;;  %v142_v37 = vadd.f32 %v479_v34, %v141_v32 }
 0x129   :  { %v144_v35 = vpop.f32.mrb[2].mxu0 }
 0x12a   :  { %v500_v36 = vpop.f32.mrb[3].mxu0 }
 0x12b   :  { %v253_v38 = vpop.f32.mrb[0].mxu1 }
 0x12c   :  { %v262_v39 = vcombine.high %v253_v38, %v253_v38  ;;  %v269_v40 = vrot.slane %v253_v38, %v170_v10  ;;  %v507_v41 = vpop.f32.mrb[1].mxu1 }
 0x12d   :  { %v256_v42 = vpop.f32.mrb[2].mxu1 }
 0x12e   :  { %v276_v43 = vrot.slane %v262_v39, %v170_v10  ;;  %v277_v44 = vcombine.high %v269_v40, %v269_v40  ;;  %v304_v45 = vadd.f32 %v269_v40, %v142_v37  ;;  %v279_v46 = vcombine.high %v256_v42, %v256_v42  ;;  %v508_v47 = vpop.f32.mrb[3].mxu1 }
 0x12f   :  { %v286_v48 = vrot.slane %v256_v42, %v170_v10 }
 0x130   :  { %v278_v49 = vcombine.high %v276_v43, %v276_v43  ;;  %v305_v50 = vadd.f32 %v277_v44, %v142_v37  ;;  %v306_v51 = vadd.f32 %v276_v43, %v142_v37  ;;  %526 = vtanh.f32 %v304_v45 }
 0x131   :  { %v293_v52 = vrot.slane %v279_v46, %v170_v10  ;;  %v294_v53 = vcombine.high %v286_v48, %v286_v48  ;;  %v308_v54 = vadd.f32 %v286_v48, %v142_v37  ;;  %v675_v46 = vmov -1e+30  }
 0x132   :  { %v307_v55 = vadd.f32 %v278_v49, %v142_v37  ;;  %528 = vtanh.f32 %v305_v50 }
 0x133   :  { %530 = vtanh.f32 %v306_v51  ;;  %v295_v56 = vcombine.high %v293_v52, %v293_v52  ;;  %v309_v57 = vadd.f32 %v294_v53, %v142_v37  ;;  %v310_v58 = vadd.f32 %v293_v52, %v142_v37 }
 0x134   :  { %532 = vtanh.f32 %v307_v55 }
 0x135   :  { %v311_v59 = vadd.f32 %v295_v56, %v142_v37  ;;  %534 = vtanh.f32 %v308_v54 }
 0x136   :  { %536 = vtanh.f32 %v309_v57 }
 0x137   :  { %538 = vtanh.f32 %v310_v58 }
 0x138   :  { %540 = vtanh.f32 %v311_v59 }
 0x13a   :  { %v527_v61 = vpop.eup %526 }
 0x13b   :  { %v327_v62 = vmul.f32 %v527_v61, %v486_v60 }
 0x13c   :  { %v529_v63 = vpop.eup %528 }
 0x13d   :  { %v531_v0 = vpop.eup %530  ;;  %v336_v1 = vsel %vm335_vm2, %v327_v62, 0.0  ;;  %v328_v2 = vmul.f32 %v529_v63, %v486_v60 }
 0x13e   :  { %v533_v4 = vpop.eup %532  ;;  %337 = vadd.xlane.f32.xlu0 %v336_v1  ;;  %v329_v6 = vmul.f32 %v531_v0, %v486_v60 }
 0x13f   :  { %v535_v7 = vpop.eup %534  ;;  %v330_v9 = vmul.f32 %v533_v4, %v486_v60  ;;  %v339_v11 = vsel %vm335_vm2, %v328_v2, 0.0 }
 0x140   :  { %v342_v8 = vsel %vm335_vm2, %v329_v6, 0.0  ;;  %v537_v10 = vpop.eup %536  ;;  %v331_v12 = vmul.f32 %v535_v7, %v486_v60 }
 0x141   :  { %343 = vadd.xlane.f32.xlu1 %v342_v8  ;;  %v539_v13 = vpop.eup %538  ;;  %v345_v14 = vsel %vm335_vm2, %v330_v9, 0.0  ;;  %v332_v15 = vmul.f32 %v537_v10, %v486_v60 }
 0x142   :  { %340 = vadd.xlane.f32.xlu0 %v339_v11  ;;  %v541_v16 = vpop.eup %540  ;;  %v348_v17 = vsel %vm335_vm2, %v331_v12, 0.0  ;;  %v333_v18 = vmul.f32 %v539_v13, %v486_v60 }
 0x143   :  { %v351_v19 = vsel %vm335_vm2, %v332_v15, 0.0  ;;  %v334_v20 = vmul.f32 %v541_v16, %v486_v60 }
 0x144   :  { %v354_v21 = vsel %vm335_vm2, %v333_v18, 0.0 }
 0x145   :  { %346 = vadd.xlane.f32.xlu1 %v345_v14  ;;  %v357_v22 = vsel %vm335_vm2, %v334_v20, 0.0 }
 0x146   :  { %349 = vadd.xlane.f32.xlu0 %v348_v17 }
 0x149   :  { %352 = vadd.xlane.f32.xlu1 %v351_v19 }
 0x14a   :  { %355 = vadd.xlane.f32.xlu0 %v354_v21 }
 0x14d   :  { %358 = vadd.xlane.f32.xlu1 %v357_v22 }
 0x1cb   :  { %v338_v24 = vpop.xlane.xlu0 %337 }
 0x1cc   :  { %v373_v28 = vrot.slane %v338_v24, %v372_v25 }
 0x1ce   :  { %v344_v26 = vpop.xlane.xlu1 %343 }
 0x1cf   :  { %v341_v27 = vpop.xlane.xlu0 %340  ;;  %v381_v30 = vrot.slane %v344_v26, %v372_v25 }
 0x1d0   :  { %v377_v29 = vrot.slane %v341_v27, %v372_v25 }
 0x1d2   :  { %v403_v31 = vsel %vm402_vm3, %v377_v29, %v373_v28  ;;  %v347_v32 = vpop.xlane.xlu1 %346 }
 0x1d3   :  { %v385_v33 = vrot.slane %v347_v32, %v372_v25  ;;  %v405_v34 = vsel %vm404_vm4, %v381_v30, %v403_v31  ;;  %v350_v35 = vpop.xlane.xlu0 %349 }
 0x1d4   :  { %v389_v36 = vrot.slane %v350_v35, %v372_v25 }
 0x1d5   :  { %v407_v37 = vsel %vm406_vm5, %v385_v33, %v405_v34 }
 0x1d6   :  { %v409_v3 = vsel %vm408_vm6, %v389_v36, %v407_v37  ;;  %v353_v38 = vpop.xlane.xlu1 %352 }
 0x1d7   :  { %v393_v5 = vrot.slane %v353_v38, %v372_v25  ;;  %v356_v39 = vpop.xlane.xlu0 %355 }
 0x1d8   :  { %v397_v40 = vrot.slane %v356_v39, %v372_v25 }
 0x1d9   :  { %v411_v41 = vsel %vm410_vm7, %v393_v5, %v409_v3 }
 0x1da   :  { %v359_v42 = vpop.xlane.xlu1 %358  ;;  %v413_v43 = vsel %vm412_vm8, %v397_v40, %v411_v41 }
 0x1db   :  { %v401_v44 = vrot.slane %v359_v42, %v372_v25 }
 0x1dd   :  { %v415_v45 = vsel %vm414_vm9, %v401_v44, %v413_v43 }
 0x1de   :  { %417 = vxpose.xlu0.b32.start [1/16] (narrow) %v415_v45, 8 }
 0x1e2   :  { %418 = vxpose.xlu0.b32.cont [2/16] (narrow) %v675_v46, 8 }
 0x1e6   :  { %419 = vxpose.xlu0.b32.cont [3/16] (narrow) %v675_v46, 8 }
 0x1ea   :  { %420 = vxpose.xlu0.b32.cont [4/16] (narrow) %v675_v46, 8 }
 0x1ee   :  { %421 = vxpose.xlu0.b32.cont [5/16] (narrow) %v675_v46, 8 }
 0x1f2   :  { %422 = vxpose.xlu0.b32.cont [6/16] (narrow) %v675_v46, 8 }
 0x1f6   :  { %423 = vxpose.xlu0.b32.cont [7/16] (narrow) %v675_v46, 8 }
 0x1fa   :  { %424 = vxpose.xlu0.b32.cont [8/16] (narrow) %v675_v46, 8 }
 0x1fe   :  { %425 = vxpose.xlu0.b32.cont [9/16] (narrow) %v675_v46, 8 }
 0x202   :  { %426 = vxpose.xlu0.b32.cont [10/16] (narrow) %v675_v46, 8 }
 0x206   :  { %427 = vxpose.xlu0.b32.cont [11/16] (narrow) %v675_v46, 8 }
 0x20a   :  { %428 = vxpose.xlu0.b32.cont [12/16] (narrow) %v675_v46, 8 }
 0x20e   :  { %429 = vxpose.xlu0.b32.cont [13/16] (narrow) %v675_v46, 8 }
 0x212   :  { %430 = vxpose.xlu0.b32.cont [14/16] (narrow) %v675_v46, 8 }
 0x216   :  { %431 = vxpose.xlu0.b32.cont [15/16] (narrow) %v675_v46, 8 }
 0x21a   :  { %432 = vxpose.xlu0.b32.end [16/16] (narrow) %v675_v46, 8 }
 0x25e   :  { %v433_v47 = vpop.trf.xlu0 }
 0x25f   :  { %v450_v48 = vsel %vm449_vm10, %v433_v47, -inf }
 0x260   :  { %451 = vmax.xlane.f32.xlu1 %v450_v48 }
 0x2ed   :  { %v452_v49 = vpop.xlane.xlu1 %451 }
 0x2ee   :  { %v453_v50 = vsub.f32 %v433_v47, %v452_v49 }
 0x2f0   :  { %v454_v51 = vmul.f32 1.442695, %v453_v50 }
 0x2f2   :  { %542 = vpow2.f32 %v454_v51 }
 0x2fc   :  { %v543_v52 = vpop.eup %542 }
 0x2fd   :  { %v456_v53 = vsel %vm449_vm10, %v543_v52, 0.0 }
 0x2fe   :  { %457 = vadd.xlane.f32.xlu1 %v456_v53 }
 0x38b   :  { %v458_v54 = vpop.xlane.xlu1 %457 }
 0x38c   :  { %544 = vrcp.f32 %v458_v54 }
 0x396   :  { %v545_v55 = vpop.eup %544 }
 0x397   :  { %v460_v56 = vmul.f32 %v545_v55, %v543_v52 }
 0x399   :  { %461 = vst [vmem:[#allocation10] sm:$0x3] %v460_v56 }
 0x39a   :  { %645 = shalt.err (!%p642_p8)
}
 0x39b   :  { %s646_s27 = scalar_lea.hbm %s800_s6, 32 }
 0x39c   :  { %p647_p9 = scmp.ne.s32.totalorder %s800_s6, %s646_s27  ;;  %p650_p10 = scmp.lt.u32.totalorder %s646_s27, %s800_s6 }
 0x39e   :  { %p652_p11 = pnand %p650_p10, %p647_p9 }
 0x3a0   :  { %655 = shalt.err (!%p652_p11)
}
 0x3a1   :  { %471 = dma.vmem_to_hbm [thread:$0]  %s469_s23, 32, %s800_s6, [#allocation4]  }
 0x3a2   :  { %662 = dma.done.wait [#allocation4], 32  }
 0x3a3   :  { %663 = vsyncadd [#allocation4], 4294967264 }
 0x3a4   :  { %475 = vsyncpa [#allocation3], 1 }
 0x3a5   :  { %476 = vsyncpa [#allocation6], 1 }
 0x3a6   :  { %477 = vsyncpa [#allocation9], 1 }
 0x3a7   :  { %478 = vsyncpa [#allocation4], 1 }

</bundles_post_ra>
